<compile_context>
chip_gen: v7x
topology: tpu7x:2x2x1
jax: 0.10.0
libtpu: 0.0.40
codegen_flags: <defaults>
</compile_context>

<pallas_src>
import jax
import jax.numpy as jnp
from jax import lax
from jax.experimental import pallas as pl
from jax.experimental.pallas import tpu as pltpu


def _round_up(x, m):
    return ((x + m - 1) // m) * m


def mlp_critic_kernel(x_ref, w1_ref, b1_ref, w2_ref, b2_ref, w3_ref, b3_ref, o_ref):
    # x_ref : [tile_b, obs_dim]  contiguous batch-major obs block (no host transpose)
    # w1_ref: [h1, obs_dim], b1_ref: [h1, 1]    (PyTorch-native [out, in] weights)
    # w2_ref: [h2, h1],      b2_ref: [h2, 1]
    # w3_ref: [h2, 1] (output weights as a column), b3_ref: (1,) scalar in SMEM
    # o_ref : [1, tile_b]  lane-dense value slab (batch on the lane axis)
    hp = lax.Precision.HIGHEST
    act_dtype = w2_ref.dtype  # bf16 path: tanh + 2nd matmul in bf16 (native on v6e/v7x)

    # Layer 1: contract obs_dim of W1 [h1, obs_dim] against obs_dim of X [tile_b, obs_dim]
    # -> [h1, tile_b]; batch lands on lanes without any host-side transpose.
    z1 = lax.dot_general(
        w1_ref[...], x_ref[...],
        dimension_numbers=(((1,), (1,)), ((), ())),
        preferred_element_type=jnp.float32, precision=hp,
    ) + b1_ref[...]
    h = jnp.tanh(z1.astype(act_dtype))          # cast BEFORE tanh (EUP in compute dtype)

    # Layer 2: [h2, h1] @ [h1, tile_b] -> [h2, tile_b], f32 accumulation on the MXU.
    z2 = jnp.dot(w2_ref[...], h, preferred_element_type=jnp.float32, precision=hp) \
        + b2_ref[...]
    a2 = jnp.tanh(z2.astype(act_dtype))

    # Output layer (out_features == 1): VPU multiply + sublane (XLU) reduce instead of
    # an N=1 MXU matmul; bias is a scalar read from SMEM.  No reduction over lanes.
    v = jnp.sum(w3_ref[...] * a2.astype(jnp.float32), axis=0, keepdims=True) + b3_ref[0]
    o_ref[...] = v.astype(o_ref.dtype)


def mlp_critic_forward(obs, params, *, tile_b=4096, compute_dtype=jnp.float32):
    """Pallas forward pass of MLPCritic.  obs: [B, obs_dim] -> returns [B] (f32)."""
    (w1, b1), (w2, b2), (w3, b3) = params
    B, obs_dim = obs.shape
    h1, h2 = w1.shape[0], w2.shape[0]

    # ---- batch tile selection (multiple of 128 lanes) ------------------------------
    #  * big tiles amortize the ~0.35 us per-grid-step overhead,
    #  * never exceed round_up(B, 128),
    #  * for large B keep >= ~8 grid steps so both v7x TensorCores are fed (the axis is
    #    "parallel"), with a 1024-lane floor so single-TC chips aren't over-split.
    tile_b = _round_up(max(int(tile_b), 128), 128)
    tile_b = min(tile_b, _round_up(B, 128))
    tile_b = min(tile_b, max(1024, _round_up(pl.cdiv(B, 8), 128)))
    n_steps = pl.cdiv(B, tile_b)               # no batch padding; partial last block OK

    # No obs.T / jnp.pad in the wrapper.  For the default f32 path this astype is a
    # no-op; for the bf16 path store obs in bf16 upstream to actually halve HBM traffic.
    x = obs if obs.dtype == compute_dtype else obs.astype(compute_dtype)
    w1c = w1.astype(compute_dtype)
    w2c = w2.astype(compute_dtype)
    b1c = b1.astype(jnp.float32)
    b2c = b2.astype(jnp.float32)
    w3_col = w3.T.astype(jnp.float32)              # [h2, 1] column for the VPU reduce
    b3_s = b3.reshape((1,)).astype(jnp.float32)    # scalar -> SMEM

    itemsize = jnp.dtype(compute_dtype).itemsize
    bytes_accessed = (
        B * obs_dim * itemsize
        + (w1c.size + w2c.size) * itemsize
        + (b1c.size + b2c.size + w3_col.size + 1) * 4
        + B * 4
    )
    cost = pl.CostEstimate(
        flops=2 * B * (obs_dim * h1 + h1 * h2 + h2),
        transcendentals=B * (h1 + h2),
        bytes_accessed=int(bytes_accessed),
    )

    out = pl.pallas_call(
        mlp_critic_kernel,
        out_shape=jax.ShapeDtypeStruct((1, B), jnp.float32),
        grid_spec=pltpu.PrefetchScalarGridSpec(
            num_scalar_prefetch=0,
            grid=(n_steps,),
            in_specs=[
                pl.BlockSpec((tile_b, obs_dim), lambda i: (i, 0)),   # contiguous obs tile
                pl.BlockSpec(w1c.shape, lambda i: (0, 0)),           # W1 [h1, obs_dim]
                pl.BlockSpec(b1c.shape, lambda i: (0, 0)),           # b1 [h1, 1]
                pl.BlockSpec(w2c.shape, lambda i: (0, 0)),           # W2 [h2, h1]
                pl.BlockSpec(b2c.shape, lambda i: (0, 0)),           # b2 [h2, 1]
                pl.BlockSpec(w3_col.shape, lambda i: (0, 0)),        # W3 column [h2, 1]
                pl.BlockSpec(memory_space=pltpu.MemorySpace.SMEM),   # b3 scalar
            ],
            out_specs=pl.BlockSpec((1, tile_b), lambda i: (0, i)),   # lane-dense output
        ),
        compiler_params=pltpu.CompilerParams(
            dimension_semantics=("parallel",),   # megacore sharding on v7x
        ),
        cost_estimate=cost,
    )(x, w1c, b1c, w2c, b2c, w3_col, b3_s)

    # torch.squeeze(v_net(obs), -1)
    return out[0]


def init_linear(key, fan_in, fan_out):
    """Deterministic init mimicking torch.nn.Linear's default U(-1/sqrt(fan_in), ...).

    Weights kept in PyTorch-native [out, in] layout; biases as [out, 1] columns.
    """
    kw, kb = jax.random.split(key)
    bound = 1.0 / jnp.sqrt(float(fan_in))
    w = jax.random.uniform(kw, (fan_out, fan_in), jnp.float32, -bound, bound)
    b = jax.random.uniform(kb, (fan_out, 1), jnp.float32, -bound, bound)
    return w, b


def mlp_critic_reference(obs, params):
    """Pure-JAX reference of the PyTorch forward (tanh activations, identity output)."""
    (w1, b1), (w2, b2), (w3, b3) = params
    hp = lax.Precision.HIGHEST
    h = jnp.tanh(jnp.dot(obs, w1.T, precision=hp) + b1[:, 0])
    h = jnp.tanh(jnp.dot(h, w2.T, precision=hp) + b2[:, 0])
    v = jnp.dot(h, w3.T, precision=hp) + b3[:, 0]
    return jnp.squeeze(v, -1)


if __name__ == "__main__":
    # MLPCritic(obs_dim=16, hidden_sizes=(32, 32), activation=nn.Tanh)
    obs_dim = 16
    hidden_sizes = (32, 32)
    batch = 200  # deliberately not a multiple of 128 to exercise partial last block

    key = jax.random.PRNGKey(0)
    k_obs, k1, k2, k3 = jax.random.split(key, 4)

    obs = jax.random.normal(k_obs, (batch, obs_dim), dtype=jnp.float32)
    params = (
        init_linear(k1, obs_dim, hidden_sizes[0]),
        init_linear(k2, hidden_sizes[0], hidden_sizes[1]),
        init_linear(k3, hidden_sizes[1], 1),
    )

    v_ref = mlp_critic_reference(obs, params)

    # f32 path (single grid step): must match the reference tightly.
    v = jax.block_until_ready(mlp_critic_forward(obs, params))
    assert v.shape == (batch,), v.shape
    assert jnp.allclose(v, v_ref, atol=1e-5, rtol=1e-5), float(
        jnp.max(jnp.abs(v - v_ref))
    )

    # Multi-step path (tile_b=128 -> 2 grid steps, partial last block on input+output).
    v_multi = jax.block_until_ready(mlp_critic_forward(obs, params, tile_b=128))
    assert v_multi.shape == (batch,), v_multi.shape
    assert jnp.allclose(v_multi, v_ref, atol=1e-5, rtol=1e-5), float(
        jnp.max(jnp.abs(v_multi - v_ref))
    )

    # bf16 compute path (recommended for large rollout batches on v6e/v7x, and the best
    # lever on bandwidth-limited v5e when obs is stored bf16): looser tolerance — only
    # input/weight/activation quantization differs, matmul accumulation stays f32.
    v_bf16 = jax.block_until_ready(
        mlp_critic_forward(obs, params, compute_dtype=jnp.bfloat16)
    )
    assert v_bf16.shape == (batch,), v_bf16.shape
    assert jnp.allclose(v_bf16, v_ref, atol=5e-2, rtol=5e-2), float(
        jnp.max(jnp.abs(v_bf16 - v_ref))
    )

    print("KERNEL_OK")
</pallas_src>

<mosaic_0001>
module attributes {stable_mosaic.version = 11 : i64} {
  func.func @mlp_critic_kernel(%arg0: i32, %arg1: memref<256x16xf32, #tpu.memory_space<vmem>>, %arg2: memref<32x16xf32, #tpu.memory_space<vmem>>, %arg3: memref<32x1xf32, #tpu.memory_space<vmem>>, %arg4: memref<32x32xf32, #tpu.memory_space<vmem>>, %arg5: memref<32x1xf32, #tpu.memory_space<vmem>>, %arg6: memref<32x1xf32, #tpu.memory_space<vmem>>, %arg7: memref<1xf32, #tpu.memory_space<smem>>, %arg8: memref<1x256xf32, #tpu.memory_space<vmem>>) attributes {dimension_semantics = [#tpu.dimension_semantics<parallel>], iteration_bounds = array<i64: 1>, scalar_prefetch = 0 : i64, scratch_operands = 0 : i64, tpu.core_type = #tpu.core_type<tc>, window_params = [{transform_indices = @transform_0, window_bounds = array<i64: 256, 16>}, {pipeline_mode = #tpu.pipeline_mode<synchronous>, transform_indices = @transform_1, window_bounds = array<i64: 32, 16>}, {pipeline_mode = #tpu.pipeline_mode<synchronous>, transform_indices = @transform_2, window_bounds = array<i64: 32, 1>}, {pipeline_mode = #tpu.pipeline_mode<synchronous>, transform_indices = @transform_3, window_bounds = array<i64: 32, 32>}, {pipeline_mode = #tpu.pipeline_mode<synchronous>, transform_indices = @transform_4, window_bounds = array<i64: 32, 1>}, {pipeline_mode = #tpu.pipeline_mode<synchronous>, transform_indices = @transform_5, window_bounds = array<i64: 32, 1>}, {transform_indices = @transform_6, window_bounds = array<i64: 1>}, {transform_indices = @transform_7, window_bounds = array<i64: 1, 256>}]} {
    %c0 = arith.constant 0 : index
    %c0_0 = arith.constant 0 : index
    %0 = vector.load %arg2[%c0, %c0_0] : memref<32x16xf32, #tpu.memory_space<vmem>>, vector<32x16xf32>
    %c0_1 = arith.constant 0 : index
    %c0_2 = arith.constant 0 : index
    %1 = vector.load %arg1[%c0_1, %c0_2] : memref<256x16xf32, #tpu.memory_space<vmem>>, vector<256x16xf32>
    %cst = arith.constant dense<0.000000e+00> : vector<32x256xf32>
    %2 = tpu.matmul %0, %1, %cst {dimension_numbers = #tpu.dot_dimension_numbers<[1], [1], [0], [0], [0, 0, 1, 0], [], []>, precision = #tpu.contract_precision<fp32>} : vector<32x16xf32>, vector<256x16xf32>, vector<32x256xf32> -> vector<32x256xf32>
    %c0_3 = arith.constant 0 : index
    %c0_4 = arith.constant 0 : index
    %3 = vector.load %arg3[%c0_3, %c0_4] : memref<32x1xf32, #tpu.memory_space<vmem>>, vector<32x1xf32>
    %4 = vector.broadcast %3 : vector<32x1xf32> to vector<32x256xf32>
    %5 = arith.addf %2, %4 : vector<32x256xf32>
    %6 = math.tanh %5 : vector<32x256xf32>
    %c0_5 = arith.constant 0 : index
    %c0_6 = arith.constant 0 : index
    %7 = vector.load %arg4[%c0_5, %c0_6] : memref<32x32xf32, #tpu.memory_space<vmem>>, vector<32x32xf32>
    %cst_7 = arith.constant dense<0.000000e+00> : vector<32x256xf32>
    %8 = tpu.matmul %7, %6, %cst_7 {dimension_numbers = #tpu.dot_dimension_numbers<[1], [0], [0], [1], [0, 0, 1, 1], [], []>, precision = #tpu.contract_precision<fp32>} : vector<32x32xf32>, vector<32x256xf32>, vector<32x256xf32> -> vector<32x256xf32>
    %c0_8 = arith.constant 0 : index
    %c0_9 = arith.constant 0 : index
    %9 = vector.load %arg5[%c0_8, %c0_9] : memref<32x1xf32, #tpu.memory_space<vmem>>, vector<32x1xf32>
    %10 = vector.broadcast %9 : vector<32x1xf32> to vector<32x256xf32>
    %11 = arith.addf %8, %10 : vector<32x256xf32>
    %12 = math.tanh %11 : vector<32x256xf32>
    %c0_10 = arith.constant 0 : index
    %c0_11 = arith.constant 0 : index
    %13 = vector.load %arg6[%c0_10, %c0_11] : memref<32x1xf32, #tpu.memory_space<vmem>>, vector<32x1xf32>
    %14 = vector.broadcast %13 : vector<32x1xf32> to vector<32x256xf32>
    %15 = arith.mulf %14, %12 : vector<32x256xf32>
    %cst_12 = arith.constant dense<0.000000e+00> : vector<256xf32>
    %16 = vector.multi_reduction <add>, %15, %cst_12 [0] : vector<32x256xf32> to vector<256xf32>
    %17 = vector.shape_cast %16 : vector<256xf32> to vector<1x256xf32>
    %c0_13 = arith.constant 0 : index
    %18 = memref.load %arg7[%c0_13] : memref<1xf32, #tpu.memory_space<smem>>
    %19 = vector.broadcast %18 : f32 to vector<1x256xf32>
    %20 = arith.addf %17, %19 : vector<1x256xf32>
    %c0_14 = arith.constant 0 : index
    %c0_15 = arith.constant 0 : index
    %21 = vector.load %arg8[%c0_14, %c0_15] : memref<1x256xf32, #tpu.memory_space<vmem>>, vector<1x256xf32>
    tpu.vector_store %arg8[%c0_14, %c0_15], %20 {strides = array<i32>} : memref<1x256xf32, #tpu.memory_space<vmem>>, vector<1x256xf32>,
    return
  }
  func.func @transform_0(%arg0: i32) -> (i32, i32) {
    %c0_i32 = arith.constant 0 : i32
    %c0_i32_0 = arith.constant 0 : i32
    return %arg0, %c0_i32 : i32, i32
  }
  func.func @transform_1(%arg0: i32) -> (i32, i32) {
    %c0_i32 = arith.constant 0 : i32
    %c0_i32_0 = arith.constant 0 : i32
    %c0_i32_1 = arith.constant 0 : i32
    return %c0_i32, %c0_i32_0 : i32, i32
  }
  func.func @transform_2(%arg0: i32) -> (i32, i32) {
    %c0_i32 = arith.constant 0 : i32
    %c0_i32_0 = arith.constant 0 : i32
    %c0_i32_1 = arith.constant 0 : i32
    return %c0_i32, %c0_i32_0 : i32, i32
  }
  func.func @transform_3(%arg0: i32) -> (i32, i32) {
    %c0_i32 = arith.constant 0 : i32
    %c0_i32_0 = arith.constant 0 : i32
    %c0_i32_1 = arith.constant 0 : i32
    return %c0_i32, %c0_i32_0 : i32, i32
  }
  func.func @transform_4(%arg0: i32) -> (i32, i32) {
    %c0_i32 = arith.constant 0 : i32
    %c0_i32_0 = arith.constant 0 : i32
    %c0_i32_1 = arith.constant 0 : i32
    return %c0_i32, %c0_i32_0 : i32, i32
  }
  func.func @transform_5(%arg0: i32) -> (i32, i32) {
    %c0_i32 = arith.constant 0 : i32
    %c0_i32_0 = arith.constant 0 : i32
    %c0_i32_1 = arith.constant 0 : i32
    return %c0_i32, %c0_i32_0 : i32, i32
  }
  func.func @transform_6(%arg0: i32) -> i32 {
    %c0_i32 = arith.constant 0 : i32
    %c0_i32_0 = arith.constant 0 : i32
    return %c0_i32 : i32
  }
  func.func @transform_7(%arg0: i32) -> (i32, i32) {
    %c0_i32 = arith.constant 0 : i32
    %c0_i32_0 = arith.constant 0 : i32
    return %c0_i32, %arg0 : i32, i32
  }
}

</mosaic_0001>

<bundles_post_ra>
// kernel: tpu_custom_call.1
= control target key start
LH: loop header
LB: loop body
LE: loop exit
PB: predicated region body
PF: predicated region fallthrough
CT: control target
= control target key end

     0   :  { %vm88_vm0 = vcmask 130048   ;;  %s3727_s0 = inlined_call_operand.vmem [shape: f32[200,16], index: 0, kind: input, shape index: {}]   ;;  %s3728_s1 = inlined_call_operand.vmem [shape: f32[32,16], index: 1, kind: input, shape index: {}]   ;;  %s3729_s2 = inlined_call_operand.vmem [shape: f32[32,1], index: 2, kind: input, shape index: {}]   ;;  %s3730_s3 = inlined_call_operand.vmem [shape: f32[32,32], index: 3, kind: input, shape index: {}]   ;;  %s3731_s4 = inlined_call_operand.vmem [shape: f32[32,1], index: 4, kind: input, shape index: {}]   ;;  %s3732_s5 = inlined_call_operand.vmem [shape: f32[32,1], index: 5, kind: input, shape index: {}]   ;;  %s3733_s6 = inlined_call_operand.<no memory space> [shape: f32[1], index: 6, kind: input, shape index: {}]   ;;  %s3734_s7 = inlined_call_operand.hbm [shape: f32[1,200], index: 7, kind: output, shape index: {}]  }
   0x1   :  { %v48_v0 = vld [vmem:[%s3727_s0 + $0x80] sm:$0xff]  ;;  %v49_v1 = vld [vmem:[%s3727_s0 + $0x88] sm:$0xff]  ;;  %v50_v7 = vld [vmem:[%s3727_s0 + $0x90] sm:$0xff] }
   0x2   :  { %v32_v2 = vld [vmem:[%s3727_s0] sm:$0xff]  ;;  %v2729_v3 = vsel %vm88_vm0, %v48_v0, 0  ;;  %v2732_v4 = vsel %vm88_vm0, %v49_v1, 0  ;;  %v33_v5 = vld [vmem:[%s3727_s0 + $0x8] sm:$0xff]  ;;  %v51_v8 = vld [vmem:[%s3727_s0 + $0x98] sm:$0xff]  ;;  %v2760_v16 = vsel %vm88_vm0, %v50_v7, 0 }
   0x3   :  { %v2738_v6 = vsel %vm88_vm0, %v32_v2, 0  ;;  %v3752_v9 = vand.u32 4294901760, %v2729_v3  ;;  %v3751_v10 = vand.u32 4294901760, %v2732_v4  ;;  %v2749_v11 = vsel %vm88_vm0, %v33_v5, 0  ;;  %v34_v13 = vld [vmem:[%s3727_s0 + $0x10] sm:$0xff]  ;;  %v35_v14 = vld [vmem:[%s3727_s0 + $0x18] sm:$0xff] }
   0x4   :  { %v3749_v12 = vand.u32 4294901760, %v2738_v6  ;;  %v3748_v15 = vand.u32 4294901760, %v2749_v11  ;;  %v2763_v17 = vsel %vm88_vm0, %v51_v8, 0  ;;  %v2766_v18 = vsel %vm88_vm0, %v34_v13, 0  ;;  %v52_v27 = vld [vmem:[%s3727_s0 + $0xa0] sm:$0xff]  ;;  %v53_v28 = vld [vmem:[%s3727_s0 + $0xa8] sm:$0xff] }
   0x5   :  { %v2771_v19 = vsub.f32 %v2729_v3, %v3752_v9  ;;  %v2776_v20 = vsub.f32 %v2732_v4, %v3751_v10  ;;  %v3747_v22 = vand.u32 4294901760, %v2760_v16  ;;  %v3746_v24 = vand.u32 4294901760, %v2763_v17  ;;  %v36_v29 = vld [vmem:[%s3727_s0 + $0x20] sm:$0xff]  ;;  %v37_v33 = vld [vmem:[%s3727_s0 + $0x28] sm:$0xff]  ;;  %v54_v37 = vld [vmem:[%s3727_s0 + $0xb0] sm:$0xff] }
   0x6   :  { %v2781_v21 = vsub.f32 %v2738_v6, %v3749_v12  ;;  %v2787_v23 = vsub.f32 %v2749_v11, %v3748_v15  ;;  %v2791_v25 = vsel %vm88_vm0, %v35_v14, 0  ;;  %v3745_v26 = vand.u32 4294901760, %v2766_v18  ;;  %v55_v42 = vld [vmem:[%s3727_s0 + $0xb8] sm:$0xff]  ;;  %v38_v47 = vld [vmem:[%s3727_s0 + $0x30] sm:$0xff]  ;;  %v56_v56 = vld [vmem:[%s3727_s0 + $0xc0] sm:$0xff] }
   0x7   :  { %v2341_v30 = vpack.c.bf16 %v2776_v20, %v2771_v19  ;;  %v2808_v31 = vsub.f32 %v2760_v16, %v3747_v22  ;;  %v3744_v32 = vand.u32 4294901760, %v2791_v25  ;;  %v2819_v35 = vsub.f32 %v2763_v17, %v3746_v24  ;;  %v39_v51 = vld [vmem:[%s3727_s0 + $0x38] sm:$0xff]  ;;  %v57_v59 = vld [vmem:[%s3727_s0 + $0xc8] sm:$0xff] }
   0x8   :  { %v2343_v34 = vpack.c.bf16 %v2787_v23, %v2781_v21  ;;  %v2824_v36 = vsub.f32 %v2766_v18, %v3745_v26  ;;  %v2835_v39 = vsel %vm88_vm0, %v52_v27, 0  ;;  %v2838_v40 = vsel %vm88_vm0, %v53_v28, 0 }
   0x9   :  { %2342 = vmatprep.subr.bf16.mxu0 %v2341_v30  ;;  %v2832_v38 = vsub.f32 %v2791_v25, %v3744_v32  ;;  %v2841_v41 = vsel %vm88_vm0, %v36_v29, 0  ;;  %v2345_v43 = vpack.c.bf16 %v2819_v35, %v2808_v31  ;;  %v3743_v44 = vand.u32 4294901760, %v2835_v39 }
   0xa   :  { %2344 = vmatpush3.bf16.xpose.msra.mxu0 %v2343_v34  ;;  %v3741_v45 = vand.u32 4294901760, %v2838_v40  ;;  %v2851_v46 = vsel %vm88_vm0, %v37_v33, 0  ;;  %v3740_v48 = vand.u32 4294901760, %v2841_v41  ;;  %v2859_v50 = vsel %vm88_vm0, %v54_v37, 0 }
   0xb   :  { %v3739_v49 = vand.u32 4294901760, %v2851_v46  ;;  %2346 = vmatprep.subr.bf16.mxu0 %v2345_v43  ;;  %v2867_v52 = vsub.f32 %v2835_v39, %v3743_v44  ;;  %v2875_v54 = vsel %vm88_vm0, %v55_v42, 0  ;;  %v3738_v55 = vand.u32 4294901760, %v2859_v50 }
   0xc   :  { %v2872_v53 = vsub.f32 %v2838_v40, %v3741_v45  ;;  %v3737_v57 = vand.u32 4294901760, %v2875_v54  ;;  %v2883_v58 = vsel %vm88_vm0, %v38_v47, 0 }
   0xd   :  { %13 = vsyncpa [#allocation4], 0  ;;  %v2347_v60 = vpack.c.bf16 %v2832_v38, %v2824_v36  ;;  %v2891_v61 = vsel %vm88_vm0, %v39_v51, 0  ;;  %v3736_v62 = vand.u32 4294901760, %v2883_v58  ;;  %v2899_v0 = vsub.f32 %v2841_v41, %v3740_v48  ;;  %v40_v5 = vld [vmem:[%s3727_s0 + $0x40] sm:$0xff]  ;;  %v41_v7 = vld [vmem:[%s3727_s0 + $0x48] sm:$0xff] }
   0xe   :  { %v2349_v63 = vpack.c.bf16 %v2872_v53, %v2867_v52  ;;  %v3735_v1 = vand.u32 4294901760, %v2891_v61  ;;  %v2903_v2 = vsel %vm88_vm0, %v56_v56, 0  ;;  %v2914_v8 = vsub.f32 %v2851_v46, %v3739_v49  ;;  %v58_v28 = vld [vmem:[%s3727_s0 + $0xd0] sm:$0xff]  ;;  %v59_v29 = vld [vmem:[%s3727_s0 + $0xd8] sm:$0xff]  ;;  %s2678_s30 = smov [#allocation3]  }
   0xf   :  { %v2919_v13 = vsub.f32 %v2859_v50, %v3738_v55  ;;  %v2924_v14 = vsub.f32 %v2875_v54, %v3737_v57  ;;  %v2927_v27 = vsel %vm88_vm0, %v57_v59, 0  ;;  %v3742_v30 = vand.u32 4294901760, %v2903_v2  ;;  %v42_v33 = vld [vmem:[%s3727_s0 + $0x50] sm:$0xff]  ;;  %v43_v47 = vld [vmem:[%s3727_s0 + $0x58] sm:$0xff]  ;;  %v45_v55 = vld [vmem:[%s3727_s0 + $0x68] sm:$0xff]  ;;  %s2029_s8 = sshll.u32 %s2678_s30, 4  ;;  %s2030_s8 = int_to_ptr.vmem [resolvable:$true] %s2029_s8 }
  0x10   :  { %v2942_v34 = vsub.f32 %v2883_v58, %v3736_v62  ;;  %v2947_v37 = vsub.f32 %v2891_v61, %v3735_v1  ;;  %v2950_v42 = vsel %vm88_vm0, %v40_v5, 0  ;;  %v2953_v43 = vsel %vm88_vm0, %v41_v7, 0  ;;  %v62_v44 = vld [vmem:[%s3727_s0 + $0xf0] sm:$0xff]  ;;  %s2651_s9 = scalar_lea.vmem %s2030_s8, 32  ;;  %p2656_p1 = scmp.lt.s32.totalorder %s2030_s8, %s2030_s8 }
  0x11   :  { %v3750_v51 = vand.u32 4294901760, %v2927_v27  ;;  %v2960_v56 = vsel %vm88_vm0, %v58_v28, 0  ;;  %v2963_v59 = vsel %vm88_vm0, %v59_v29, 0  ;;  %v2351_v5 = vpack.c.bf16 %v2914_v8, %v2899_v0  ;;  %v61_v28 = vld [vmem:[%s3727_s0 + $0xe8] sm:$0xff]  ;;  %v44_v29 = vld [vmem:[%s3727_s0 + $0x60] sm:$0xff]  ;;  %p2652_p0 = scmp.ne.s32.totalorder %s2030_s8, %s2651_s9  ;;  %p2657_p2 = scmp.lt.s32.totalorder %s2651_s9, %s2651_s9 }
  0x12   :  { %2348 = vmatpush3.bf16.xpose.msra.mxu0 %v2347_v60  ;;  %3777 = vst [vmem:[#allocation6_spill] sm:$0xff] %v2942_v34  ;;  %3778 = vst [vmem:[#allocation7_spill] sm:$0xff] %v2947_v37  ;;  %v60_v60 = vld [vmem:[%s3727_s0 + $0xe0] sm:$0xff]  ;;  %v2353_v7 = vpack.c.bf16 %v2924_v14, %v2919_v13  ;;  %v2984_v1 = vsub.f32 %v2903_v2, %v3742_v30  ;;  %v3753_v62 = vand.u32 4294901760, %v2950_v42  ;;  %v3754_v57 = vand.u32 4294901760, %v2953_v43 }
  0x13   :  { %2350 = vmatprep.subr.bf16.mxu0 %v2349_v63  ;;  %v2973_v63 = vsel %vm88_vm0, %v42_v33, 0  ;;  %v2989_v33 = vsel %vm88_vm0, %v43_v47, 0  ;;  %v2355_v49 = vpack.c.bf16 %v2947_v37, %v2942_v34  ;;  %v3755_v48 = vand.u32 4294901760, %v2960_v56  ;;  %p2658_p3 = por %p2657_p2, %p2656_p1 }
  0x14   :  { %3779 = vst [vmem:[#allocation8_spill] sm:$0xff] %v2973_v63  ;;  %3780 = vst [vmem:[#allocation9_spill] sm:$0xff] %v2989_v33  ;;  %v3756_v45 = vand.u32 4294901760, %v2963_v59  ;;  %v2999_v30 = vsel %vm88_vm0, %v60_v60, 0  ;;  %v3007_v47 = vsub.f32 %v2927_v27, %v3750_v51  ;;  %v3757_v32 = vand.u32 4294901760, %v2973_v63  ;;  %v63_v60 = vld [vmem:[%s3727_s0 + $0xf8] sm:$0xff] }
  0x15   :  { %3781 = vst [vmem:[#allocation10_spill] sm:$0xff] %v2999_v30  ;;  %v3011_v26 = vsel %vm88_vm0, %v61_v28, 0  ;;  %v3014_v24 = vsel %vm88_vm0, %v44_v29, 0  ;;  %v3023_v51 = vsel %vm88_vm0, %v45_v55, 0  ;;  %v46_v28 = vld [vmem:[%s3727_s0 + $0x70] sm:$0xff]  ;;  %v3031_v29 = vsub.f32 %v2950_v42, %v3753_v62  ;;  %v47_v55 = vld [vmem:[%s3727_s0 + $0x78] sm:$0xff]  ;;  %p2659_p4 = pnand %p2658_p3, %p2652_p0 }
  0x16   :  { %3782 = vst [vmem:[#allocation11_spill] sm:$0xff] %v3011_v26  ;;  %3783 = vst [vmem:[#allocation12_spill] sm:$0xff] %v3014_v24  ;;  %v3036_v10 = vsub.f32 %v2953_v43, %v3754_v57  ;;  %v3040_v12 = vsel %vm88_vm0, %v62_v44, 0  ;;  %v3048_v62 = vsub.f32 %v2960_v56, %v3755_v48  ;;  %v3053_v57 = vsub.f32 %v2963_v59, %v3756_v45  ;;  %v28_v45 = vld [vmem:[%s3728_s1] sm:$0xff] }
  0x17   :  { %3784 = vst [vmem:[#allocation13_spill] sm:$0xff] %v3023_v51  ;;  %3785 = vst [vmem:[#allocation14_spill] sm:$0xff] %v3040_v12  ;;  %v3057_v44 = vsel %vm88_vm0, %v63_v60, 0  ;;  %v3067_v22 = vsel %vm88_vm0, %v46_v28, 0  ;;  %v3788_v60 = vand.u32 4294901760, %v2989_v33  ;;  %v3789_v9 = vand.u32 4294901760, %v2999_v30 }
  0x18   :  { %3786 = vst [vmem:[#allocation15_spill] sm:$0xff] %v3057_v44  ;;  %3787 = vst [vmem:[#allocation16_spill] sm:$0xff] %v3067_v22  ;;  %v3790_v15 = vand.u32 4294901760, %v3011_v26  ;;  %v3088_v28 = vsel %vm88_vm0, %v47_v55, 0  ;;  %vm1235_vm1 = vcmask 261120  }
  0x19   :  { %3791 = vst [vmem:[#allocation17_spill] sm:$0xff] %v3088_v28 }
  0x1a   :  { %2352 = vmatpush3.bf16.xpose.msra.mxu0 %v2351_v5  ;;  %v3062_v5 = vsub.f32 %v2973_v63, %v3757_v32  ;;  %v3080_v32 = vsub.f32 %v2999_v30, %v3789_v9  ;;  %v3085_v48 = vsub.f32 %v3011_v26, %v3790_v15  ;;  %v3792_v63 = vand.u32 4294901760, %v3014_v24 }
  0x1b   :  { %2354 = vmatprep.subr.bf16.mxu0 %v2353_v7  ;;  %v3075_v7 = vsub.f32 %v2989_v33, %v3788_v60  ;;  %v3793_v9 = vand.u32 4294901760, %v2729_v3  ;;  %v3794_v30 = vand.u32 4294901760, %v2732_v4  ;;  %v3796_v15 = vand.u32 4294901760, %v3023_v51 }
  0x1c   :  { %v3093_v37 = vsub.f32 %v3014_v24, %v3792_v63  ;;  %v3797_v26 = vand.u32 4294901760, %v2738_v6  ;;  %v3798_v63 = vand.u32 4294901760, %v2749_v11  ;;  %v90_v60 = vsel %vm88_vm0, %v28_v45, 0 }
  0x1d   :  { %v3101_v34 = vpack.c.bf16 %v3794_v30, %v3793_v9  ;;  %v3106_v55 = vsub.f32 %v3023_v51, %v3796_v15  ;;  %v3799_v33 = vand.u32 4294901760, %v2760_v16  ;;  %v3800_v3 = vand.u32 4294901760, %v2763_v17 }
  0x1e   :  { %v3112_v24 = vpack.c.bf16 %v3798_v63, %v3797_v26  ;;  %v2357_v30 = vpack.c.bf16 %v3007_v47, %v2984_v1  ;;  %v3802_v9 = vand.u32 4294901760, %v3040_v12  ;;  %v3803_v6 = vand.u32 4294901760, %v3057_v44 }
  0x1f   :  { %3795 = vst [vmem:[#allocation18_spill] sm:$0xff] %v3101_v34  ;;  %v3119_v4 = vpack.c.bf16 %v3800_v3, %v3799_v33  ;;  %2278 = vmatprep.subr.bf16.mxu1 %v3101_v34  ;;  %v3134_v16 = vand.u32 4294901760, %v90_v60  ;;  %v341_v17 = vand.u32 4294901760, %v2781_v21  ;;  %v348_v26 = vand.u32 4294901760, %v2787_v23 }
  0x20   :  { %v3126_v15 = vsub.f32 %v3040_v12, %v3802_v9  ;;  %v3131_v11 = vsub.f32 %v3057_v44, %v3803_v6  ;;  %2280 = vmatpush3.bf16.xpose.msra.mxu1 %v3112_v24  ;;  %v2359_v45 = vpack.c.bf16 %v3036_v10, %v3031_v29  ;;  %v3805_v33 = vand.u32 4294901760, %v3067_v22 }
  0x21   :  { %3801 = vst [vmem:[#allocation19_spill] sm:$0xff] %v3119_v4  ;;  %3804 = vst [vmem:[#allocation20_spill] sm:$0xff] %v3134_v16  ;;  %v3806_v3 = vand.u32 4294901760, %v3088_v28  ;;  %v3152_v6 = vsub.f32 %v90_v60, %v3134_v16  ;;  %2282 = vmatprep.subr.bf16.mxu1 %v3119_v4  ;;  %v2361_v44 = vpack.c.bf16 %v3053_v57, %v3048_v62  ;;  %v3809_v12 = vand.u32 4294901760, %v2835_v39 }
  0x22   :  { %v3144_v63 = vsub.f32 %v3067_v22, %v3805_v33  ;;  %2356 = vmatpush3.bf16.xpose.msra.mxu0 %v2355_v49  ;;  %v3807_v49 = vand.u32 4294901760, %v2766_v18  ;;  %v3811_v22 = vand.u32 4294901760, %v2841_v41  ;;  %v3813_v60 = vand.u32 4294901760, %v2859_v50 }
  0x23   :  { %v3149_v9 = vsub.f32 %v3088_v28, %v3806_v3  ;;  %2358 = vmatprep.subr.bf16.mxu0 %v2357_v30  ;;  %2149 = vmatprep.mubr.f32.mxu0 %v3152_v6  ;;  %v3808_v3 = vand.u32 4294901760, %v2791_v25  ;;  %v3810_v28 = vand.u32 4294901760, %v2838_v40  ;;  %v3812_v30 = vand.u32 4294901760, %v2851_v46 }
  0x24   :  { %v3814_v18 = vand.u32 4294901760, %v2875_v54  ;;  %v3815_v25 = vand.u32 4294901760, %v2883_v58  ;;  %v3816_v39 = vand.u32 4294901760, %v2891_v61  ;;  %v460_v41 = vand.u32 4294901760, %v2776_v20 }
  0x25   :  { %v3170_v16 = vpack.c.bf16 %v3808_v3, %v3807_v49  ;;  %v3176_v33 = vpack.c.bf16 %v3810_v28, %v3809_v12  ;;  %v3182_v51 = vpack.c.bf16 %v3812_v30, %v3811_v22  ;;  %v3197_v12 = vand.u32 4294901760, %v3152_v6 }
  0x26   :  { %v3188_v4 = vpack.c.bf16 %v3814_v18, %v3813_v60  ;;  %v3194_v49 = vpack.c.bf16 %v3816_v39, %v3815_v25  ;;  %v453_v22 = vand.u32 4294901760, %v2771_v19  ;;  %v342_v46 = vsub.f32 %v2781_v21, %v341_v17 }
  0x27   :  { %v3817_v50 = vand.u32 4294901760, %v2903_v2  ;;  %v3818_v54 = vand.u32 4294901760, %v2927_v27  ;;  %v3819_v61 = vand.u32 4294901760, %v2950_v42  ;;  %v3820_v28 = vand.u32 4294901760, %v2953_v43 }
  0x28   :  { %v297_v3 = vsub.f32 %v3152_v6, %v3197_v12  ;;  %v349_v30 = vsub.f32 %v2787_v23, %v348_v26  ;;  %v3821_v18 = vand.u32 4294901760, %v2960_v56  ;;  %v3822_v21 = vand.u32 4294901760, %v2963_v59  ;;  %2284 = vmatpush3.bf16.xpose.msra.mxu1 %v3170_v16 }
  0x29   :  { %v3208_v58 = vpack.c.bf16 %v3818_v54, %v3817_v50  ;;  %v3214_v60 = vpack.c.bf16 %v3820_v28, %v3819_v61  ;;  %v454_v27 = vsub.f32 %v2771_v19, %v453_v22  ;;  %v461_v25 = vsub.f32 %v2776_v20, %v460_v41  ;;  %2286 = vmatprep.subr.bf16.mxu1 %v3176_v33 }
  0x2a   :  { %v3223_v2 = vpack.c.bf16 %v3822_v21, %v3821_v18  ;;  %v343_v42 = vand.u32 4294901760, %v342_v46  ;;  %v3228_v43 = vand.u32 4294901760, %v297_v3  ;;  %v350_v39 = vand.u32 4294901760, %v349_v30  ;;  %2360 = vmatpush3.bf16.xpose.msra.mxu0 %v2359_v45 }
  0x2b   :  { %v3230_v50 = vpack.c.bf16 %v460_v41, %v453_v22  ;;  %v3232_v54 = vpack.c.bf16 %v348_v26, %v341_v17  ;;  %v455_v23 = vand.u32 4294901760, %v454_v27  ;;  %v462_v56 = vand.u32 4294901760, %v461_v25  ;;  %2362 = vmatprep.subr.bf16.mxu0 %v2361_v44 }
  0x2c   :  { %v467_v59 = vand.u32 4294901760, %v2808_v31  ;;  %v474_v19 = vand.u32 4294901760, %v2819_v35  ;;  %2069 = vmatprep.mubr.f32.mxu1 %v3228_v43  ;;  %v3238_v20 = vpack.c.bf16 %v350_v39, %v343_v42  ;;  %v355_v46 = vand.u32 4294901760, %v2824_v36 }
  0x2d   :  { %v362_v22 = vand.u32 4294901760, %v2832_v38  ;;  %v481_v17 = vand.u32 4294901760, %v2867_v52  ;;  %v3243_v26 = vpack.c.bf16 %v462_v56, %v455_v23  ;;  %v488_v44 = vand.u32 4294901760, %v2872_v53 }
  0x2e   :  { %v468_v41 = vsub.f32 %v2808_v31, %v467_v59  ;;  %v475_v61 = vsub.f32 %v2819_v35, %v474_v19  ;;  %v3247_v28 = vpack.c.bf16 %v474_v19, %v467_v59  ;;  %v356_v45 = vsub.f32 %v2824_v36, %v355_v46 }
  0x2f   :  { %v363_v3 = vsub.f32 %v2832_v38, %v362_v22  ;;  %v3251_v30 = vpack.c.bf16 %v362_v22, %v355_v46  ;;  %v482_v18 = vsub.f32 %v2867_v52, %v481_v17  ;;  %v369_v25 = vand.u32 4294901760, %v2899_v0 }
  0x30   :  { %v469_v21 = vand.u32 4294901760, %v468_v41  ;;  %v476_v27 = vand.u32 4294901760, %v475_v61  ;;  %v357_v42 = vand.u32 4294901760, %v356_v45  ;;  %v376_v35 = vand.u32 4294901760, %v2914_v8  ;;  %2288 = vmatpush3.bf16.xpose.msra.mxu1 %v3182_v51  ;;  %v3823_v61 = vld [vmem:[#allocation6_spill] sm:$0xff] }
  0x31   :  { %v364_v31 = vand.u32 4294901760, %v363_v3  ;;  %v483_v39 = vand.u32 4294901760, %v482_v18  ;;  %v489_v36 = vsub.f32 %v2872_v53, %v488_v44  ;;  %v370_v38 = vsub.f32 %v2899_v0, %v369_v25  ;;  %2290 = vmatprep.subr.bf16.mxu1 %v3188_v4 }
  0x32   :  { %v3257_v23 = vpack.c.bf16 %v476_v27, %v469_v21  ;;  %v3261_v56 = vpack.c.bf16 %v488_v44, %v481_v17  ;;  %v377_v59 = vsub.f32 %v2914_v8, %v376_v35  ;;  %v3267_v19 = vpack.c.bf16 %v376_v35, %v369_v25  ;;  %v3825_v8 = vld [vmem:[#allocation7_spill] sm:$0xff] }
  0x33   :  { %v3264_v52 = vpack.c.bf16 %v364_v31, %v357_v42  ;;  %v495_v46 = vand.u32 4294901760, %v2919_v13  ;;  %v490_v22 = vand.u32 4294901760, %v489_v36  ;;  %v371_v41 = vand.u32 4294901760, %v370_v38 }
  0x34   :  { %v502_v53 = vand.u32 4294901760, %v2924_v14  ;;  %v383_v0 = vand.u32 4294901760, %v3823_v61  ;;  %v3824_v17 = vpack.c.bf16 %v3075_v7, %v3062_v5  ;;  %v378_v45 = vand.u32 4294901760, %v377_v59 }
  0x35   :  { %v496_v3 = vsub.f32 %v2919_v13, %v495_v46  ;;  %v390_v18 = vand.u32 4294901760, %v3825_v8  ;;  %v509_v21 = vand.u32 4294901760, %v2984_v1  ;;  %v3826_v27 = vpack.c.bf16 %v3085_v48, %v3080_v32 }
  0x36   :  { %2364 = vmatpush3.bf16.xpose.msra.mxu0 %v3824_v17  ;;  %v3282_v44 = vpack.c.bf16 %v490_v22, %v483_v39  ;;  %v503_v25 = vsub.f32 %v2924_v14, %v502_v53  ;;  %v384_v42 = vsub.f32 %v3823_v61, %v383_v0  ;;  %v3286_v31 = vpack.c.bf16 %v502_v53, %v495_v46 }
  0x37   :  { %2366 = vmatprep.subr.bf16.mxu0 %v3826_v27  ;;  %v3288_v35 = vpack.c.bf16 %v378_v45, %v371_v41  ;;  %v497_v36 = vand.u32 4294901760, %v496_v3  ;;  %v391_v13 = vsub.f32 %v3825_v8, %v390_v18  ;;  %v3291_v38 = vpack.c.bf16 %v390_v18, %v383_v0 }
  0x38   :  { %v504_v59 = vand.u32 4294901760, %v503_v25  ;;  %v385_v17 = vand.u32 4294901760, %v384_v42  ;;  %v510_v40 = vsub.f32 %v2984_v1, %v509_v21  ;;  %v516_v39 = vand.u32 4294901760, %v3007_v47  ;;  %2292 = vmatpush3.bf16.xpose.msra.mxu1 %v3194_v49 }
  0x39   :  { %v392_v22 = vand.u32 4294901760, %v391_v13  ;;  %v397_v14 = vand.u32 4294901760, %v3031_v29  ;;  %v404_v61 = vand.u32 4294901760, %v3036_v10  ;;  %v523_v46 = vand.u32 4294901760, %v3048_v62  ;;  %2294 = vmatprep.subr.bf16.mxu1 %v3208_v58 }
  0x3a   :  { %v3298_v41 = vpack.c.bf16 %v504_v59, %v497_v36  ;;  %v511_v53 = vand.u32 4294901760, %v510_v40  ;;  %v517_v45 = vsub.f32 %v3007_v47, %v516_v39  ;;  %v3301_v0 = vpack.c.bf16 %v516_v39, %v509_v21 }
  0x3b   :  { %v3304_v3 = vpack.c.bf16 %v392_v22, %v385_v17  ;;  %v398_v1 = vsub.f32 %v3031_v29, %v397_v14  ;;  %v405_v8 = vsub.f32 %v3036_v10, %v404_v61  ;;  %v3308_v18 = vpack.c.bf16 %v404_v61, %v397_v14 }
  0x3c   :  { %v518_v27 = vand.u32 4294901760, %v517_v45  ;;  %v524_v25 = vsub.f32 %v3048_v62, %v523_v46  ;;  %v530_v40 = vand.u32 4294901760, %v3053_v57  ;;  %v411_v47 = vand.u32 4294901760, %v3062_v5  ;;  %v29_v62 = vld [vmem:[%s3728_s1 + $0x8] sm:$0xff] }
  0x3d   :  { %v3827_v21 = vpack.c.bf16 %v3106_v55, %v3093_v37  ;;  %v399_v42 = vand.u32 4294901760, %v398_v1  ;;  %v406_v36 = vand.u32 4294901760, %v405_v8  ;;  %v418_v29 = vand.u32 4294901760, %v3075_v7 }
  0x3e   :  { %v537_v10 = vand.u32 4294901760, %v3080_v32  ;;  %v3828_v13 = vpack.c.bf16 %v3131_v11, %v3126_v15  ;;  %v3325_v59 = vpack.c.bf16 %v518_v27, %v511_v53  ;;  %v525_v17 = vand.u32 4294901760, %v524_v25 }
  0x3f   :  { %2368 = vmatpush3.bf16.xpose.msra.mxu0 %v3827_v21  ;;  %v531_v39 = vsub.f32 %v3053_v57, %v530_v40  ;;  %v412_v22 = vsub.f32 %v3062_v5, %v411_v47  ;;  %v3329_v14 = vpack.c.bf16 %v406_v36, %v399_v42  ;;  %v419_v61 = vsub.f32 %v3075_v7, %v418_v29  ;;  %v30_v57 = vld [vmem:[%s3728_s1 + $0x10] sm:$0xff] }
  0x40   :  { %2370 = vmatprep.subr.bf16.mxu0 %v3828_v13  ;;  %v3332_v45 = vpack.c.bf16 %v530_v40, %v523_v46  ;;  %v3334_v1 = vpack.c.bf16 %v418_v29, %v411_v47  ;;  %v538_v13 = vsub.f32 %v3080_v32, %v537_v10  ;;  %v544_v53 = vand.u32 4294901760, %v3085_v48  ;;  %2296 = vmatpush3.bf16.xpose.msra.mxu1 %v3214_v60 }
  0x41   :  { %v532_v8 = vand.u32 4294901760, %v531_v39  ;;  %v413_v21 = vand.u32 4294901760, %v412_v22  ;;  %v93_v27 = vsel %vm88_vm0, %v29_v62, 0  ;;  %v420_v5 = vand.u32 4294901760, %v419_v61  ;;  %2298 = vmatprep.subr.bf16.mxu1 %v3223_v2 }
  0x42   :  { %v425_v25 = vand.u32 4294901760, %v3093_v37  ;;  %v432_v7 = vand.u32 4294901760, %v3106_v55  ;;  %v539_v40 = vand.u32 4294901760, %v538_v13  ;;  %v545_v47 = vsub.f32 %v3085_v48, %v544_v53  ;;  %v3834_v13 = vld [vmem:[#allocation9_spill] sm:$0xff] }
  0x43   :  { %v3344_v46 = vpack.c.bf16 %v532_v8, %v525_v17  ;;  %v3347_v42 = vpack.c.bf16 %v544_v53, %v537_v10  ;;  %v3350_v32 = vpack.c.bf16 %v420_v5, %v413_v21  ;;  %v96_v62 = vsel %vm88_vm0, %v30_v57, 0 }
  0x44   :  { %v426_v36 = vsub.f32 %v3093_v37, %v425_v25  ;;  %v433_v29 = vsub.f32 %v3106_v55, %v432_v7  ;;  %v546_v39 = vand.u32 4294901760, %v545_v47  ;;  %v3356_v17 = vpack.c.bf16 %v432_v7, %v425_v25  ;;  %v3832_v55 = vld [vmem:[#allocation8_spill] sm:$0xff] }
  0x45   :  { %3829 = vst [vmem:[#allocation6_spill] sm:$0xff] %v3347_v42  ;;  %v551_v22 = vand.u32 4294901760, %v3126_v15  ;;  %v3831_v48 = vpack.c.bf16 %v3149_v9, %v3144_v63  ;;  %v3362_v10 = vand.u32 4294901760, %v93_v27  ;;  %v558_v37 = vand.u32 4294901760, %v3131_v11  ;;  %v31_v47 = vld [vmem:[%s3728_s1 + $0x18] sm:$0xff] }
  0x46   :  { %3830 = vst [vmem:[#allocation7_spill] sm:$0xff] %v3356_v17  ;;  %v427_v61 = vand.u32 4294901760, %v426_v36  ;;  %v434_v8 = vand.u32 4294901760, %v433_v29  ;;  %v3833_v21 = vand.u32 4294901760, %v3832_v55  ;;  %v3835_v53 = vand.u32 4294901760, %v3834_v13 }
  0x47   :  { %2372 = vmatpush3.bf16.xpose.msra.mxu0 %v3831_v48  ;;  %v3372_v5 = vpack.c.bf16 %v546_v39, %v539_v40  ;;  %v552_v25 = vsub.f32 %v3126_v15, %v551_v22  ;;  %v439_v7 = vand.u32 4294901760, %v3144_v63  ;;  %v559_v29 = vsub.f32 %v3131_v11, %v558_v37  ;;  %v3838_v40 = vld [vmem:[#allocation11_spill] sm:$0xff] }
  0x48   :  { %2374 = vmatprep.subr.bf16.mxu0 %v3101_v34  ;;  %v3370_v57 = vpack.c.bf16 %v3835_v53, %v3833_v21  ;;  %v3379_v36 = vpack.c.bf16 %v434_v8, %v427_v61  ;;  %v446_v48 = vand.u32 4294901760, %v3149_v9  ;;  %v3383_v55 = vpack.c.bf16 %v558_v37, %v551_v22  ;;  %v3836_v21 = vld [vmem:[#allocation10_spill] sm:$0xff] }
  0x49   :  { %v3837_v13 = vand.u32 4294901760, %v3836_v21  ;;  %v3839_v39 = vand.u32 4294901760, %v3838_v40  ;;  %v3391_v15 = vand.u32 4294901760, %v96_v62  ;;  %v553_v34 = vand.u32 4294901760, %v552_v25  ;;  %v3840_v25 = vld [vmem:[#allocation19_spill] sm:$0xff] }
  0x4a   :  { %v440_v17 = vsub.f32 %v3144_v63, %v439_v7  ;;  %v306_v61 = vsub.f32 %v93_v27, %v3362_v10  ;;  %v560_v8 = vand.u32 4294901760, %v559_v29  ;;  %v447_v11 = vsub.f32 %v3149_v9, %v446_v48  ;;  %2300 = vmatpush3.bf16.xpose.msra.mxu1 %v3370_v57  ;;  %v3847_v40 = vld [vmem:[#allocation15_spill] sm:$0xff] }
  0x4b   :  { %v3389_v53 = vpack.c.bf16 %v3839_v39, %v3837_v13  ;;  %v3396_v42 = vpack.c.bf16 %v446_v48, %v439_v7  ;;  %v99_v22 = vsel %vm88_vm0, %v31_v47, 0  ;;  %v317_v63 = vsub.f32 %v96_v62, %v3391_v15 }
  0x4c   :  { %v441_v37 = vand.u32 4294901760, %v440_v17  ;;  %v3400_v21 = vpack.c.bf16 %v560_v8, %v553_v34  ;;  %v448_v13 = vand.u32 4294901760, %v447_v11  ;;  %v3406_v9 = vand.u32 4294901760, %v99_v22  ;;  %v3841_v17 = vld [vmem:[#allocation12_spill] sm:$0xff]  ;;  %v3843_v34 = vld [vmem:[#allocation13_spill] sm:$0xff] }
  0x4d   :  { %2302 = vmatprep.subr.bf16.mxu1 %v3389_v53  ;;  %v3842_v7 = vand.u32 4294901760, %v3841_v17  ;;  %v3844_v47 = vand.u32 4294901760, %v3843_v34  ;;  %v3848_v39 = vand.u32 4294901760, %v3847_v40  ;;  %v3849_v11 = vld [vmem:[#allocation16_spill] sm:$0xff]  ;;  %v307_v34 = vand.u32 4294901760, %v306_v61 }
  0x4e   :  { %2150 = vmatmul.mubr.f32.vlgmr.msra.gmra.mrb[0].mxu0 %v3152_v6  ;;  %v3408_v27 = vpack.c.bf16 %v448_v13, %v441_v37  ;;  %v3845_v6 = vld [vmem:[#allocation14_spill] sm:$0xff]  ;;  %v328_v62 = vsub.f32 %v99_v22, %v3406_v9  ;;  %v3850_v37 = vand.u32 4294901760, %v3849_v11  ;;  %v3851_v13 = vld [vmem:[#allocation17_spill] sm:$0xff] }
  0x4f   :  { %2376 = vmatpush3.bf16.xpose.msra.mxu0 %v3112_v24  ;;  %2151 = vmatprep.mubr.f32.mxu0 %v306_v61  ;;  %v3415_v29 = vpack.c.bf16 %v3844_v47, %v3842_v7  ;;  %v3846_v48 = vand.u32 4294901760, %v3845_v6  ;;  %v3852_v17 = vand.u32 4294901760, %v3851_v13  ;;  %v308_v22 = vsub.f32 %v306_v61, %v307_v34 }
  0x50   :  { %2378 = vmatprep.subr.bf16.mxu0 %v3840_v25  ;;  %v318_v47 = vand.u32 4294901760, %v317_v63  ;;  %v329_v40 = vand.u32 4294901760, %v328_v62 }
  0x51   :  { %v3421_v8 = vpack.c.bf16 %v3848_v39, %v3846_v48  ;;  %v3432_v7 = vpack.c.bf16 %v3852_v17, %v3850_v37  ;;  %v309_v6 = vand.u32 4294901760, %v308_v22 }
  0x52   :  { %2152 = vmatmul.mubr.f32.gmra.mrb[2].mxu0 %v306_v61  ;;  %2304 = vmatpush3.bf16.xpose.msra.mxu1 %v3415_v29  ;;  %v319_v48 = vsub.f32 %v317_v63, %v318_v47  ;;  %v330_v11 = vsub.f32 %v328_v62, %v329_v40 }
  0x53   :  { %2153 = vmatprep.mubr.f32.mxu0 %v317_v63  ;;  %2306 = vmatprep.subr.bf16.mxu1 %v3421_v8 }
  0x54   :  { %v320_v39 = vand.u32 4294901760, %v319_v48 }
  0x56   :  { %2154 = vmatmul.mubr.f32.gmra.mrb[4].mxu0 %v317_v63  ;;  %v1208_v63 = vld [vmem:[%s3730_s3 + $0x8] sm:$0xff] }
  0x57   :  { %2380 = vmatpush3.bf16.xpose.msra.mxu0 %v3170_v16  ;;  %2155 = vmatprep.mubr.f32.mxu0 %v328_v62  ;;  %v1240_v13 = vsel %vm1235_vm1, %v1208_v63, 0 }
  0x58   :  { %2382 = vmatprep.subr.bf16.mxu0 %v3176_v33 }
  0x5a   :  { %2156 = vmatmul.mubr.f32.gmra.mrb[6].mxu0 %v328_v62  ;;  %2308 = vmatpush3.bf16.xpose.msra.mxu1 %v3432_v7 }
  0x5b   :  { %2189 = vmatprep.mubr.f32.mxu0 %v3197_v12  ;;  %2310 = vmatprep.subr.bf16.mxu1 %v3243_v26  ;;  %v331_v26 = vand.u32 4294901760, %v330_v11 }
  0x5f   :  { %2384 = vmatpush3.bf16.xpose.msra.mxu0 %v3182_v51 }
  0x60   :  { %2386 = vmatprep.subr.bf16.mxu0 %v3188_v4 }
  0x61   :  { %2070 = vmatmul.mubr.f32.vlgmr.msra.gmra.mrb[0].mxu1 %v3228_v43  ;;  %v3853_v43 = vld [vmem:[#allocation20_spill] sm:$0xff] }
  0x62   :  { %2312 = vmatpush3.bf16.xpose.msra.mxu1 %v3238_v20  ;;  %2071 = vmatprep.mubr.f32.mxu1 %v309_v6  ;;  %v65_v20 = vld [vmem:[%s3729_s2 + $0x8] sm:$0xff] }
  0x63   :  { %2314 = vmatprep.subr.bf16.mxu1 %v3257_v23  ;;  %v1212_v23 = vld [vmem:[%s3731_s4 + $0x8] sm:$0xff] }
  0x65   :  { %2072 = vmatmul.mubr.f32.gmra.mrb[2].mxu1 %v309_v6 }
  0x66   :  { %2073 = vmatprep.mubr.f32.mxu1 %v320_v39 }
  0x67   :  { %2388 = vmatpush3.bf16.xpose.msra.mxu0 %v3194_v49 }
  0x68   :  { %2390 = vmatprep.subr.bf16.mxu0 %v3208_v58 }
  0x69   :  { %2074 = vmatmul.mubr.f32.gmra.mrb[4].mxu1 %v320_v39 }
  0x6a   :  { %2316 = vmatpush3.bf16.xpose.msra.mxu1 %v3264_v52  ;;  %2075 = vmatprep.mubr.f32.mxu1 %v331_v26  ;;  %v1214_v52 = vld [vmem:[%s3731_s4 + $0x18] sm:$0xff] }
  0x6b   :  { %2318 = vmatprep.subr.bf16.mxu1 %v3282_v44  ;;  %v1947_v44 = vld [vmem:[%s3732_s5 + $0x8] sm:$0xff] }
  0x6d   :  { %2076 = vmatmul.mubr.f32.gmra.mrb[6].mxu1 %v331_v26 }
  0x6e   :  { %2109 = vmatprep.mubr.f32.mxu1 %v3853_v43 }
  0x6f   :  { %2392 = vmatpush3.bf16.xpose.msra.mxu0 %v3214_v60 }
  0x70   :  { %2394 = vmatprep.subr.bf16.mxu0 %v3223_v2 }
  0x72   :  { %2320 = vmatpush3.bf16.xpose.msra.mxu1 %v3288_v35  ;;  %v1949_v35 = vld [vmem:[%s3732_s5 + $0x18] sm:$0xff] }
  0x73   :  { %2322 = vmatprep.subr.bf16.mxu1 %v3298_v41  ;;  %v3855_v41 = vld [vmem:[#allocation7_spill] sm:$0xff] }
  0x77   :  { %2396 = vmatpush3.bf16.xpose.msra.mxu0 %v3370_v57 }
  0x78   :  { %2398 = vmatprep.subr.bf16.mxu0 %v3389_v53 }
  0x7a   :  { %2324 = vmatpush3.bf16.xpose.msra.mxu1 %v3304_v3 }
  0x7b   :  { %2326 = vmatprep.subr.bf16.mxu1 %v3325_v59 }
  0x7f   :  { %2400 = vmatpush3.bf16.xpose.msra.mxu0 %v3415_v29 }
  0x80   :  { %2402 = vmatprep.subr.bf16.mxu0 %v3421_v8 }
  0x82   :  { %2328 = vmatpush3.bf16.xpose.msra.mxu1 %v3329_v14 }
  0x83   :  { %2330 = vmatprep.subr.bf16.mxu1 %v3344_v46 }
  0x87   :  { %2404 = vmatpush3.bf16.xpose.msra.mxu0 %v3432_v7 }
  0x88   :  { %2406 = vmatprep.subr.bf16.mxu0 %v3230_v50  ;;  %v66_v50 = vld [vmem:[%s3729_s2 + $0x10] sm:$0xff] }
  0x8a   :  { %2332 = vmatpush3.bf16.xpose.msra.mxu1 %v3350_v32  ;;  %v1207_v32 = vld [vmem:[%s3730_s3] sm:$0xff] }
  0x8b   :  { %2334 = vmatprep.subr.bf16.mxu1 %v3372_v5 }
  0x8e   :  { %2190 = vmatmul.mubr.f32.vlgmr.msra.gmra.mrb[0].mxu0 %v3197_v12  ;;  %v64_v12 = vld [vmem:[%s3729_s2] sm:$0xff] }
  0x8f   :  { %2408 = vmatpush3.bf16.xpose.msra.mxu0 %v3232_v54  ;;  %2191 = vmatprep.mubr.f32.mxu0 %v307_v34  ;;  %v2675_v54 = vmov 0  }
  0x90   :  { %2410 = vmatprep.subr.bf16.mxu0 %v3247_v28  ;;  %2617 = vset.pattern.permute.xlu0 %v2675_v54  ;;  %v67_v28 = vld [vmem:[%s3729_s2 + $0x18] sm:$0xff] }
  0x91   :  { %70 = vperm.xlu0 %2617, %v64_v12   ;;  %2618 = vset.pattern.permute.xlu1 %v2675_v54 }
  0x92   :  { %2192 = vmatmul.mubr.f32.gmra.mrb[2].mxu0 %v307_v34  ;;  %2336 = vmatpush3.bf16.xpose.msra.mxu1 %v3379_v36 }
  0x93   :  { %2193 = vmatprep.mubr.f32.mxu0 %v318_v47  ;;  %2338 = vmatprep.subr.bf16.mxu1 %v3400_v21 }
  0x94   :  { %80 = vperm.xlu1 %2618, %v66_v50  }
  0x95   :  { %75 = vperm.xlu0 %2617, %v65_v20  }
  0x96   :  { %2194 = vmatmul.mubr.f32.gmra.mrb[4].mxu0 %v318_v47 }
  0x97   :  { %2412 = vmatpush3.bf16.xpose.msra.mxu0 %v3251_v30  ;;  %2195 = vmatprep.mubr.f32.mxu0 %v329_v40  ;;  %v1211_v30 = vld [vmem:[%s3731_s4] sm:$0xff] }
  0x98   :  { %2414 = vmatprep.subr.bf16.mxu0 %v3261_v56  ;;  %85 = vperm.xlu1 %2618, %v67_v28   ;;  %v1213_v56 = vld [vmem:[%s3731_s4 + $0x10] sm:$0xff] }
  0x99   :  { %1217 = vperm.xlu0 %2617, %v1211_v30  }
  0x9a   :  { %2196 = vmatmul.mubr.f32.gmra.mrb[6].mxu0 %v329_v40  ;;  %2340 = vmatpush3.bf16.xpose.msra.mxu1 %v3408_v27  ;;  %v3571_v40 = vand.u32 4294901760, %v1240_v13 }
  0x9b   :  { %2229 = vmatprep.mubr.f32.mxu0 %v3853_v43 }
  0x9c   :  { %1222 = vperm.xlu1 %2618, %v1212_v23   ;;  %v3582_v30 = vsub.f32 %v1240_v13, %v3571_v40 }
  0x9d   :  { %1227 = vperm.xlu0 %2617, %v1213_v56  }
  0x9f   :  { %2416 = vmatpush3.bf16.xpose.msra.mxu0 %v3267_v19  ;;  %v1946_v19 = vld [vmem:[%s3732_s5] sm:$0xff] }
  0xa0   :  { %2418 = vmatprep.subr.bf16.mxu0 %v3286_v31  ;;  %1232 = vperm.xlu1 %2618, %v1214_v52   ;;  %v1948_v31 = vld [vmem:[%s3732_s5 + $0x10] sm:$0xff] }
  0xa1   :  { %2110 = vmatmul.mubr.f32.vlgmr.msra.gmra.mrb[0].mxu1 %v3853_v43  ;;  %1952 = vperm.xlu0 %2617, %v1946_v19  }
  0xa2   :  { %2111 = vmatprep.mubr.f32.mxu1 %v3362_v10 }
  0xa4   :  { %1957 = vperm.xlu1 %2618, %v1947_v44   ;;  %v1210_v44 = vld [vmem:[%s3730_s3 + $0x18] sm:$0xff] }
  0xa5   :  { %2112 = vmatmul.mubr.f32.gmra.mrb[2].mxu1 %v3362_v10  ;;  %1962 = vperm.xlu0 %2617, %v1948_v31  }
  0xa6   :  { %2113 = vmatprep.mubr.f32.mxu1 %v3391_v15 }
  0xa7   :  { %2420 = vmatpush3.bf16.xpose.msra.mxu0 %v3291_v38  ;;  %v3854_v38 = vld [vmem:[#allocation6_spill] sm:$0xff] }
  0xa8   :  { %2422 = vmatprep.subr.bf16.mxu0 %v3301_v0  ;;  %1967 = vperm.xlu1 %2618, %v1949_v35   ;;  %v3856_v0 = vld [vmem:[#allocation18_spill] sm:$0xff] }
  0xa9   :  { %2114 = vmatmul.mubr.f32.gmra.mrb[4].mxu1 %v3391_v15 }
  0xaa   :  { %2115 = vmatprep.mubr.f32.mxu1 %v3406_v9 }
  0xad   :  { %2116 = vmatmul.mubr.f32.gmra.mrb[6].mxu1 %v3406_v9 }
  0xaf   :  { %2424 = vmatpush3.bf16.xpose.msra.mxu0 %v3308_v18 }
  0xb0   :  { %2426 = vmatprep.subr.bf16.mxu0 %v3332_v45 }
  0xb7   :  { %2428 = vmatpush3.bf16.xpose.msra.mxu0 %v3334_v1 }
  0xb8   :  { %2430 = vmatprep.subr.bf16.mxu0 %v3854_v38 }
  0xbf   :  { %2432 = vmatpush3.bf16.xpose.msra.mxu0 %v3855_v41 }
  0xc0   :  { %2434 = vmatprep.subr.bf16.mxu0 %v3383_v55 }
  0xc7   :  { %2436 = vmatpush3.bf16.xpose.msra.mxu0 %v3396_v42 }
  0xc8   :  { %2438 = vmatprep.subr.bf16.mxu0 %v3856_v0 }
  0xce   :  { %2230 = vmatmul.mubr.f32.vlgmr.msra.gmra.mrb[0].mxu0 %v3853_v43 }
  0xcf   :  { %2440 = vmatpush3.bf16.xpose.msra.mxu0 %v3112_v24  ;;  %2231 = vmatprep.mubr.f32.mxu0 %v3362_v10 }
  0xd0   :  { %2442 = vmatprep.subr.bf16.mxu0 %v3840_v25 }
  0xd2   :  { %2232 = vmatmul.mubr.f32.gmra.mrb[2].mxu0 %v3362_v10 }
  0xd3   :  { %2233 = vmatprep.mubr.f32.mxu0 %v3391_v15 }
  0xd6   :  { %2234 = vmatmul.mubr.f32.gmra.mrb[4].mxu0 %v3391_v15 }
  0xd7   :  { %2444 = vmatpush3.bf16.xpose.msra.mxu0 %v3170_v16  ;;  %2235 = vmatprep.mubr.f32.mxu0 %v3406_v9 }
  0xd8   :  { %2446 = vmatprep.subr.bf16.mxu0 %v3176_v33 }
  0xda   :  { %2236 = vmatmul.mubr.f32.gmra.mrb[6].mxu0 %v3406_v9 }
  0xdb   :  { %2269 = vmatprep.mubr.f32.mxu0 %v3853_v43 }
  0xdf   :  { %2448 = vmatpush3.bf16.xpose.msra.mxu0 %v3182_v51 }
  0xe0   :  { %2450 = vmatprep.subr.bf16.mxu0 %v3188_v4 }
  0xe7   :  { %2452 = vmatpush3.bf16.xpose.msra.mxu0 %v3194_v49 }
  0xe8   :  { %2454 = vmatprep.subr.bf16.mxu0 %v3208_v58 }
  0xef   :  { %2456 = vmatpush3.bf16.xpose.msra.mxu0 %v3214_v60  ;;  %v2676_v60 = vmov 0.0  }
  0xf0   :  { %2458 = vmatprep.subr.bf16.mxu0 %v3223_v2  ;;  %1320 = vmatprep.mubr.f32.mxu1 %v2676_v60 }
  0xf7   :  { %2460 = vmatpush3.bf16.xpose.msra.mxu0 %v3370_v57 }
  0xf8   :  { %2462 = vmatprep.subr.bf16.mxu0 %v3389_v53 }
  0xff   :  { %2464 = vmatpush3.bf16.xpose.msra.mxu0 %v3415_v29 }
 0x100   :  { %2466 = vmatprep.subr.bf16.mxu0 %v3421_v8 }
 0x107   :  { %2468 = vmatpush3.bf16.xpose.msra.mxu0 %v3432_v7 }
 0x10e   :  { %2270 = vmatmul.mubr.f32.vlgmr.msra.gmra.mrb[0].mxu0 %v3853_v43  ;;  %v1209_v43 = vld [vmem:[%s3730_s3 + $0x10] sm:$0xff] }
 0x10f   :  { %2271 = vmatprep.mubr.f32.mxu0 %v3362_v10  ;;  %v1243_v23 = vsel %vm1235_vm1, %v1209_v43, 0 }
 0x110   :  { %v71_v3 = vpop.permute.xlu0 %70 }
 0x112   :  { %2272 = vmatmul.mubr.f32.gmra.mrb[2].mxu0 %v3362_v10 }
 0x113   :  { %2273 = vmatprep.mubr.f32.mxu0 %v3391_v15  ;;  %v81_v5 = vpop.permute.xlu1 %80 }
 0x114   :  { %v76_v14 = vpop.permute.xlu0 %75 }
 0x116   :  { %2274 = vmatmul.mubr.f32.gmra.mrb[4].mxu0 %v3391_v15  ;;  %v1237_v15 = vsel %vm1235_vm1, %v1207_v32, 0 }
 0x117   :  { %2275 = vmatprep.mubr.f32.mxu0 %v3406_v9  ;;  %v3565_v25 = vand.u32 4294901760, %v1237_v15  ;;  %v86_v62 = vpop.permute.xlu1 %85 }
 0x119   :  { %v3569_v22 = vsub.f32 %v1237_v15, %v3565_v25 }
 0x11a   :  { %2276 = vmatmul.mubr.f32.gmra.mrb[6].mxu0 %v3406_v9 }
 0x11b   :  { %v1323_v54 = vand.u32 4294901760, %v3569_v22 }
 0x11d   :  { %v1324_v0 = vsub.f32 %v3569_v22, %v1323_v54 }
 0x174   :  { %v565_v24 = vpop.f32.mrb[0].mxu1 }
 0x175   :  { %v567_v51 = vpop.f32.mrb[1].mxu1  ;;  %v2517_v18 = vadd.f32 %v565_v24, %v71_v3  ;;  %v3597_v24 = vand.u32 4294901760, %v1243_v23 }
 0x176   :  { %v2519_v59 = vadd.f32 %v567_v51, %v71_v3 }
 0x178   :  { %v572_v4 = vpop.f32.mrb[2].mxu1 }
 0x179   :  { %v574_v16 = vpop.f32.mrb[3].mxu1  ;;  %v2521_v10 = vadd.f32 %v572_v4, %v76_v14 }
 0x17a   :  { %v2523_v57 = vadd.f32 %v574_v16, %v76_v14 }
 0x17c   :  { %v579_v33 = vpop.f32.mrb[4].mxu1 }
 0x17d   :  { %v581_v49 = vpop.f32.mrb[5].mxu1  ;;  %v2525_v21 = vadd.f32 %v579_v33, %v81_v5  ;;  %v1334_v33 = vand.u32 4294901760, %v3582_v30 }
 0x17e   :  { %v2527_v9 = vadd.f32 %v581_v49, %v81_v5  ;;  %v1246_v49 = vsel %vm1235_vm1, %v1210_v44, 0 }
 0x180   :  { %v586_v58 = vpop.f32.mrb[6].mxu1 }
 0x181   :  { %v588_v2 = vpop.f32.mrb[7].mxu1  ;;  %v2529_v17 = vadd.f32 %v586_v58, %v86_v62 }
 0x182   :  { %v2531_v7 = vadd.f32 %v588_v2, %v86_v62 }
 0x1e1   :  { %v1173_v45 = vpop.f32.mrb[0].mxu0 }
 0x1e2   :  { %v2518_v1 = vadd.f32 %v2517_v18, %v1173_v45  ;;  %v1175_v46 = vpop.f32.mrb[1].mxu0 }
 0x1e3   :  { %v2520_v42 = vadd.f32 %v2519_v59, %v1175_v46 }
 0x1e4   :  { %2619 = vtanh.f32 %v2518_v1 }
 0x1e5   :  { %2621 = vtanh.f32 %v2520_v42  ;;  %v1180_v36 = vpop.f32.mrb[2].mxu0 }
 0x1e6   :  { %v2522_v55 = vadd.f32 %v2521_v10, %v1180_v36  ;;  %v1182_v53 = vpop.f32.mrb[3].mxu0  ;;  %v3619_v10 = vsub.f32 %v1243_v23, %v3597_v24 }
 0x1e7   :  { %v2524_v61 = vadd.f32 %v2523_v57, %v1182_v53  ;;  %v3626_v53 = vand.u32 4294901760, %v1246_v49 }
 0x1e8   :  { %2623 = vtanh.f32 %v2522_v55  ;;  %v1345_v43 = vand.u32 4294901760, %v3619_v10 }
 0x1e9   :  { %2625 = vtanh.f32 %v2524_v61  ;;  %v1187_v27 = vpop.f32.mrb[4].mxu0  ;;  %v3645_v23 = vsub.f32 %v1246_v49, %v3626_v53 }
 0x1ea   :  { %v2526_v29 = vadd.f32 %v2525_v21, %v1187_v27  ;;  %v1189_v8 = vpop.f32.mrb[5].mxu0  ;;  %v1346_v49 = vsub.f32 %v3619_v10, %v1345_v43 }
 0x1eb   :  { %v2528_v37 = vadd.f32 %v2527_v9, %v1189_v8 }
 0x1ec   :  { %2627 = vtanh.f32 %v2526_v29 }
 0x1ed   :  { %2629 = vtanh.f32 %v2528_v37  ;;  %v1194_v34 = vpop.f32.mrb[6].mxu0 }
 0x1ee   :  { %v2620_v47 = vpop.eup %2619  ;;  %v2530_v6 = vadd.f32 %v2529_v17, %v1194_v34  ;;  %v1196_v48 = vpop.f32.mrb[7].mxu0 }
 0x1ef   :  { %v2622_v39 = vpop.eup %2621  ;;  %v2532_v11 = vadd.f32 %v2531_v7, %v1196_v48  ;;  %v1250_v26 = vand.u32 4294901760, %v2620_v47  ;;  %v1325_v7 = vand.u32 4294901760, %v1324_v0 }
 0x1f0   :  { %2631 = vtanh.f32 %v2530_v6  ;;  %v1248_v12 = vand.u32 4294901760, %v2622_v39 }
 0x1f1   :  { %2633 = vtanh.f32 %v2532_v11  ;;  %v3576_v50 = vsub.f32 %v2620_v47, %v1250_v26 }
 0x1f2   :  { %v2624_v20 = vpop.eup %2623  ;;  %v3579_v28 = vsub.f32 %v2622_v39, %v1248_v12  ;;  %v1335_v39 = vsub.f32 %v3582_v30, %v1334_v33 }
 0x1f3   :  { %v2626_v56 = vpop.eup %2625  ;;  %v1254_v52 = vand.u32 4294901760, %v2624_v20  ;;  %v1373_v19 = vand.u32 4294901760, %v3576_v50 }
 0x1f4   :  { %v1252_v31 = vand.u32 4294901760, %v2626_v56  ;;  %v1367_v35 = vand.u32 4294901760, %v3579_v28 }
 0x1f5   :  { %v3590_v38 = vpack.c.bf16 %v1254_v52, %v1250_v26  ;;  %v3592_v41 = vsub.f32 %v2624_v20, %v1254_v52  ;;  %v1374_v3 = vsub.f32 %v3576_v50, %v1373_v19 }
 0x1f6   :  { %v2628_v51 = vpop.eup %2627  ;;  %v3599_v4 = vpack.c.bf16 %v1252_v31, %v1248_v12  ;;  %v3601_v16 = vsub.f32 %v2626_v56, %v1252_v31  ;;  %v1368_v45 = vsub.f32 %v3579_v28, %v1367_v35 }
 0x1f7   :  { %v2630_v58 = vpop.eup %2629  ;;  %v1258_v2 = vand.u32 4294901760, %v2628_v51  ;;  %v1385_v18 = vand.u32 4294901760, %v3592_v41  ;;  %v2487_v59 = vpack.c.bf16 %v3592_v41, %v3576_v50  ;;  %v1375_v63 = vand.u32 4294901760, %v1374_v3 }
 0x1f8   :  { %2470 = vmatprep.subr.bf16.mxu1 %v3599_v4  ;;  %v1256_v14 = vand.u32 4294901760, %v2630_v58  ;;  %v1379_v1 = vand.u32 4294901760, %v3601_v16  ;;  %v2485_v46 = vpack.c.bf16 %v3601_v16, %v3579_v28  ;;  %v1369_v8 = vand.u32 4294901760, %v1368_v45 }
 0x1f9   :  { %2472 = vmatpush1.bf16.msra.mxu1 %v3590_v38  ;;  %v3615_v42 = vsub.f32 %v2628_v51, %v1258_v2  ;;  %v1386_v32 = vsub.f32 %v3592_v41, %v1385_v18  ;;  %v3621_v57 = vpack.c.bf16 %v1385_v18, %v1373_v19  ;;  %v1223_v41 = vpop.permute.xlu1 %1222 }
 0x1fa   :  { %v2632_v5 = vpop.eup %2631  ;;  %v3623_v36 = vsub.f32 %v2630_v58, %v1256_v14  ;;  %v1380_v55 = vsub.f32 %v3601_v16, %v1379_v1  ;;  %v3628_v15 = vpack.c.bf16 %v1379_v1, %v1367_v35  ;;  %v1336_v35 = vand.u32 4294901760, %v1335_v39 }
 0x1fb   :  { %v2634_v61 = vpop.eup %2633  ;;  %v1262_v21 = vand.u32 4294901760, %v2632_v5  ;;  %v1387_v9 = vand.u32 4294901760, %v1386_v32  ;;  %v1397_v27 = vand.u32 4294901760, %v3615_v42 }
 0x1fc   :  { %v1260_v29 = vand.u32 4294901760, %v2634_v61  ;;  %v1381_v62 = vand.u32 4294901760, %v1380_v55  ;;  %v1391_v37 = vand.u32 4294901760, %v3623_v36 }
 0x1fd   :  { %v3632_v13 = vpack.c.bf16 %v1262_v21, %v1258_v2  ;;  %v1408_v17 = vsub.f32 %v2632_v5, %v1262_v21  ;;  %v2479_v34 = vpack.c.bf16 %v1387_v9, %v1375_v63  ;;  %v1398_v11 = vsub.f32 %v3615_v42, %v1397_v27  ;;  %v1233_v32 = vpop.permute.xlu1 %1232 }
 0x1fe   :  { %v3634_v47 = vpack.c.bf16 %v1260_v29, %v1256_v14  ;;  %v1402_v6 = vsub.f32 %v2634_v61, %v1260_v29  ;;  %v2477_v48 = vpack.c.bf16 %v1381_v62, %v1369_v8  ;;  %v1392_v20 = vsub.f32 %v3623_v36, %v1391_v37 }
 0x1ff   :  { %v1409_v26 = vand.u32 4294901760, %v1408_v17  ;;  %v2491_v12 = vpack.c.bf16 %v1408_v17, %v3615_v42  ;;  %v1399_v0 = vand.u32 4294901760, %v1398_v11  ;;  %v1356_v2 = vand.u32 4294901760, %v3645_v23 }
 0x200   :  { %2474 = vmatprep.subr.bf16.mxu1 %v3634_v47  ;;  %v1403_v28 = vand.u32 4294901760, %v1402_v6  ;;  %v2489_v56 = vpack.c.bf16 %v1402_v6, %v3623_v36  ;;  %v1393_v16 = vand.u32 4294901760, %v1392_v20  ;;  %v1347_v14 = vand.u32 4294901760, %v1346_v49 }
 0x201   :  { %2476 = vmatpush1.bf16.msra.mxu1 %v3632_v13  ;;  %v1410_v52 = vsub.f32 %v1408_v17, %v1409_v26  ;;  %v2507_v19 = vpack.c.bf16 %v1409_v26, %v1397_v27  ;;  %v1357_v45 = vsub.f32 %v3645_v23, %v1356_v2  ;;  %v1958_v21 = vpop.permute.xlu1 %1957 }
 0x202   :  { %2478 = vmatprep.subr.bf16.mxu1 %v2477_v48  ;;  %v1404_v44 = vsub.f32 %v1402_v6, %v1403_v28  ;;  %v2505_v31 = vpack.c.bf16 %v1403_v28, %v1391_v37 }
 0x203   :  { %v1411_v51 = vand.u32 4294901760, %v1410_v52  ;;  %v1358_v1 = vand.u32 4294901760, %v1357_v45 }
 0x204   :  { %1326 = vmatmul.mubr.f32.vlgmr.msra.gmra.mrb[8].mxu1 %v1325_v7  ;;  %v1405_v58 = vand.u32 4294901760, %v1404_v44 }
 0x205   :  { %2480 = vmatpush1.bf16.msra.mxu1 %v2479_v34  ;;  %1331 = vmatprep.mubr.f32.mxu1 %v2676_v60  ;;  %v2483_v3 = vpack.c.bf16 %v1411_v51, %v1399_v0  ;;  %v1968_v39 = vpop.permute.xlu1 %1967  ;;  %v2006_v51 = vlaneseq }
 0x206   :  { %v2481_v18 = vpack.c.bf16 %v1405_v58, %v1393_v16 }
 0x207   :  { %vm2020_vm2 = vcmp.lt.s32.totalorder %v2006_v51, 256 }
 0x208   :  { %1337 = vmatmul.mubr.f32.gmra.mrb[10].mxu1 %v1336_v35  ;;  %2482 = vmatprep.subr.bf16.mxu1 %v2481_v18  ;;  %v2677_v35 = vmov 1966171168  }
 0x209   :  { %2484 = vmatpush1.bf16.msra.mxu1 %v2483_v3  ;;  %1342 = vmatprep.mubr.f32.mxu1 %v2676_v60  ;;  %v2004_v0 = vunpack.c.l.s4 %v2677_v35  ;;  %v1997_v3 = vstv %s3733_s6 }
 0x20a   :  { %2486 = vmatprep.subr.bf16.mxu1 %v2485_v46 }
 0x20b   :  { %v2005_v18 = vunpack.c.0.s8 %v2004_v0 }
 0x20c   :  { %1348 = vmatmul.mubr.f32.gmra.mrb[12].mxu1 %v1347_v14  ;;  %v2007_v14 = vshrl.u32 %v2006_v51, 7 }
 0x20d   :  { %1353 = vmatprep.mubr.f32.mxu1 %v2676_v60 }
 0x210   :  { %1359 = vmatmul.mubr.f32.gmra.mrb[14].mxu1 %v1358_v1 }
 0x211   :  { %1469 = vmatprep.mubr.f32.mxu1 %v2676_v60 }
 0x214   :  { %1471 = vmatmul.mubr.f32.vlgmr.msra.gmra.mrb[8].mxu1 %v3565_v25 }
 0x215   :  { %2488 = vmatpush1.bf16.msra.mxu1 %v2487_v59  ;;  %1476 = vmatprep.mubr.f32.mxu1 %v2676_v60 }
 0x216   :  { %2490 = vmatprep.subr.bf16.mxu1 %v2489_v56 }
 0x218   :  { %1478 = vmatmul.mubr.f32.gmra.mrb[10].mxu1 %v3571_v40 }
 0x219   :  { %2492 = vmatpush1.bf16.msra.mxu1 %v2491_v12  ;;  %1483 = vmatprep.mubr.f32.mxu1 %v2676_v60 }
 0x21a   :  { %2494 = vmatprep.subr.bf16.mxu1 %v3599_v4 }
 0x21c   :  { %1485 = vmatmul.mubr.f32.gmra.mrb[12].mxu1 %v3597_v24 }
 0x21d   :  { %1490 = vmatprep.mubr.f32.mxu1 %v2676_v60 }
 0x220   :  { %1492 = vmatmul.mubr.f32.gmra.mrb[14].mxu1 %v3626_v53 }
 0x221   :  { %1578 = vmatprep.mubr.f32.mxu1 %v2676_v60 }
 0x224   :  { %1581 = vmatmul.mubr.f32.vlgmr.msra.gmra.mrb[8].mxu1 %v3569_v22  ;;  %v1218_v22 = vpop.permute.xlu0 %1217 }
 0x225   :  { %2496 = vmatpush1.bf16.msra.mxu1 %v3590_v38  ;;  %1586 = vmatprep.mubr.f32.mxu1 %v2676_v60 }
 0x226   :  { %2498 = vmatprep.subr.bf16.mxu1 %v3634_v47 }
 0x228   :  { %1589 = vmatmul.mubr.f32.gmra.mrb[10].mxu1 %v3582_v30  ;;  %v1228_v59 = vpop.permute.xlu0 %1227 }
 0x229   :  { %2500 = vmatpush1.bf16.msra.mxu1 %v3632_v13  ;;  %1594 = vmatprep.mubr.f32.mxu1 %v2676_v60 }
 0x22a   :  { %2502 = vmatprep.subr.bf16.mxu1 %v3628_v15 }
 0x22c   :  { %1597 = vmatmul.mubr.f32.gmra.mrb[12].mxu1 %v3619_v10 }
 0x22d   :  { %1602 = vmatprep.mubr.f32.mxu1 %v2676_v60 }
 0x230   :  { %1605 = vmatmul.mubr.f32.gmra.mrb[14].mxu1 %v3645_v23 }
 0x231   :  { %1683 = vmatprep.mubr.f32.mxu1 %v2676_v60 }
 0x234   :  { %1687 = vmatmul.mubr.f32.vlgmr.msra.gmra.mrb[8].mxu1 %v1323_v54 }
 0x235   :  { %2504 = vmatpush1.bf16.msra.mxu1 %v3621_v57  ;;  %1692 = vmatprep.mubr.f32.mxu1 %v2676_v60 }
 0x236   :  { %2506 = vmatprep.subr.bf16.mxu1 %v2505_v31 }
 0x238   :  { %1696 = vmatmul.mubr.f32.gmra.mrb[10].mxu1 %v1334_v33 }
 0x239   :  { %2508 = vmatpush1.bf16.msra.mxu1 %v2507_v19  ;;  %1701 = vmatprep.mubr.f32.mxu1 %v2676_v60 }
 0x23a   :  { %2510 = vmatprep.subr.bf16.mxu1 %v3599_v4 }
 0x23c   :  { %1705 = vmatmul.mubr.f32.gmra.mrb[12].mxu1 %v1345_v43 }
 0x23d   :  { %1710 = vmatprep.mubr.f32.mxu1 %v2676_v60 }
 0x240   :  { %1714 = vmatmul.mubr.f32.gmra.mrb[14].mxu1 %v1356_v2 }
 0x241   :  { %1808 = vmatprep.mubr.f32.mxu1 %v2676_v60 }
 0x244   :  { %1810 = vmatmul.mubr.f32.vlgmr.msra.gmra.mrb[8].mxu1 %v3565_v25 }
 0x245   :  { %2512 = vmatpush1.bf16.msra.mxu1 %v3590_v38  ;;  %1815 = vmatprep.mubr.f32.mxu1 %v2676_v60 }
 0x246   :  { %2514 = vmatprep.subr.bf16.mxu1 %v3634_v47 }
 0x248   :  { %1817 = vmatmul.mubr.f32.gmra.mrb[10].mxu1 %v3571_v40 }
 0x249   :  { %2516 = vmatpush1.bf16.msra.mxu1 %v3632_v13  ;;  %1822 = vmatprep.mubr.f32.mxu1 %v2676_v60 }
 0x24c   :  { %1824 = vmatmul.mubr.f32.gmra.mrb[12].mxu1 %v3597_v24 }
 0x24d   :  { %1829 = vmatprep.mubr.f32.mxu1 %v2676_v60 }
 0x250   :  { %1831 = vmatmul.mubr.f32.gmra.mrb[14].mxu1 %v3626_v53 }
 0x251   :  { %1909 = vmatprep.mubr.f32.mxu1 %v2676_v60 }
 0x254   :  { %1911 = vmatmul.mubr.f32.vlgmr.msra.gmra.mrb[8].mxu1 %v3565_v25 }
 0x255   :  { %1916 = vmatprep.mubr.f32.mxu1 %v2676_v60 }
 0x258   :  { %1918 = vmatmul.mubr.f32.gmra.mrb[10].mxu1 %v3571_v40 }
 0x259   :  { %1923 = vmatprep.mubr.f32.mxu1 %v2676_v60 }
 0x25c   :  { %1925 = vmatmul.mubr.f32.gmra.mrb[12].mxu1 %v3597_v24 }
 0x25d   :  { %1930 = vmatprep.mubr.f32.mxu1 %v2676_v60 }
 0x260   :  { %1932 = vmatmul.mubr.f32.gmra.mrb[14].mxu1 %v3626_v53  ;;  %v1953_v53 = vpop.permute.xlu0 %1952 }
 0x264   :  { %v1963_v13 = vpop.permute.xlu0 %1962 }
 0x327   :  { %v1912_v50 = vpop.f32.mrb[8].mxu1 }
 0x328   :  { %v2533_v54 = vadd.f32 %v1912_v50, %v1218_v22  ;;  %v1914_v30 = vpop.f32.mrb[9].mxu1 }
 0x329   :  { %v2534_v38 = vadd.f32 %v1914_v30, %v1218_v22 }
 0x32a   :  { %2635 = vtanh.f32 %v2533_v54  ;;  %v2008_v54 = vsub.s32 %v2005_v18, %v2007_v14 }
 0x32b   :  { %v1919_v4 = vpop.f32.mrb[10].mxu1  ;;  %2637 = vtanh.f32 %v2534_v38 }
 0x32c   :  { %v2535_v25 = vadd.f32 %v1919_v4, %v1223_v41  ;;  %v1921_v33 = vpop.f32.mrb[11].mxu1 }
 0x32d   :  { %v2536_v40 = vadd.f32 %v1921_v33, %v1223_v41 }
 0x32e   :  { %2639 = vtanh.f32 %v2535_v25 }
 0x32f   :  { %2641 = vtanh.f32 %v2536_v40  ;;  %v1926_v24 = vpop.f32.mrb[12].mxu1 }
 0x330   :  { %v2537_v46 = vadd.f32 %v1926_v24, %v1228_v59  ;;  %v1928_v60 = vpop.f32.mrb[13].mxu1 }
 0x331   :  { %v2538_v42 = vadd.f32 %v1928_v60, %v1228_v59 }
 0x332   :  { %2643 = vtanh.f32 %v2537_v46 }
 0x333   :  { %2645 = vtanh.f32 %v2538_v42  ;;  %v1933_v10 = vpop.f32.mrb[14].mxu1 }
 0x334   :  { %v2539_v57 = vadd.f32 %v1933_v10, %v1233_v32  ;;  %v1935_v5 = vpop.f32.mrb[15].mxu1  ;;  %v2636_v55 = vpop.eup %2635 }
 0x335   :  { %v2540_v36 = vadd.f32 %v1935_v5, %v1233_v32  ;;  %v2638_v15 = vpop.eup %2637  ;;  %v1970_v9 = vmul.f32 %v2636_v55, %v1953_v53 }
 0x336   :  { %2647 = vtanh.f32 %v2539_v57  ;;  %v1971_v29 = vmul.f32 %v2638_v15, %v1953_v53 }
 0x337   :  { %2649 = vtanh.f32 %v2540_v36 }
 0x338   :  { %v2640_v61 = vpop.eup %2639 }
 0x339   :  { %v2642_v63 = vpop.eup %2641  ;;  %v1972_v27 = vmul.f32 %v2640_v61, %v1958_v21 }
 0x33a   :  { %v1973_v8 = vmul.f32 %v2642_v63, %v1958_v21 }
 0x33b   :  { %v1978_v62 = vadd.f32 %v1972_v27, %v1970_v9 }
 0x33c   :  { %v2644_v37 = vpop.eup %2643  ;;  %v1987_v17 = vadd.f32 %v1973_v8, %v1971_v29 }
 0x33d   :  { %v2646_v7 = vpop.eup %2645  ;;  %v1974_v34 = vmul.f32 %v2644_v37, %v1963_v13 }
 0x33e   :  { %v1975_v47 = vmul.f32 %v2646_v7, %v1963_v13 }
 0x33f   :  { %v1979_v6 = vadd.f32 %v1978_v62, %v1974_v34 }
 0x340   :  { %v2648_v48 = vpop.eup %2647  ;;  %v1988_v11 = vadd.f32 %v1987_v17, %v1975_v47 }
 0x341   :  { %v2650_v26 = vpop.eup %2649  ;;  %v1976_v43 = vmul.f32 %v2648_v48, %v1968_v39 }
 0x342   :  { %v1977_v12 = vmul.f32 %v2650_v26, %v1968_v39 }
 0x343   :  { %v1980_v20 = vadd.f32 %v1979_v6, %v1976_v43 }
 0x344   :  { %v1989_v28 = vadd.f32 %v1988_v11, %v1977_v12 }
 0x345   :  { %v1981_v23 = vrot.slane %v1980_v20, 4 }
 0x346   :  { %v1990_v56 = vrot.slane %v1989_v28, 4 }
 0x347   :  { %v1982_v52 = vadd.f32 %v1981_v23, %v1980_v20 }
 0x348   :  { %v1991_v19 = vadd.f32 %v1990_v56, %v1989_v28 }
 0x349   :  { %v1983_v44 = vrot.slane %v1982_v52, 2 }
 0x34a   :  { %v1992_v31 = vrot.slane %v1991_v19, 2 }
 0x34b   :  { %v1984_v16 = vadd.f32 %v1983_v44, %v1982_v52 }
 0x34c   :  { %v1993_v58 = vadd.f32 %v1992_v31, %v1991_v19 }
 0x34d   :  { %v1985_v49 = vrot.slane %v1984_v16, 1 }
 0x34e   :  { %v1994_v2 = vrot.slane %v1993_v58, 1 }
 0x34f   :  { %v1986_v45 = vadd.f32 %v1985_v49, %v1984_v16 }
 0x350   :  { %v1995_v1 = vadd.f32 %v1994_v2, %v1993_v58 }
 0x351   :  { %v1998_v22 = vadd.f32 %v1997_v3, %v1986_v45 }
 0x352   :  { %v1999_v50 = vadd.f32 %v1997_v3, %v1995_v1 }
 0x354   :  { %v2002_v30 = vcombine.low %v1998_v22, %v1999_v50 }
 0x356   :  { %v2009_v38 = vrot.slane %v2002_v30, %v2008_v54 }
 0x358   :  { %v2016_v41 = vrot.slane %v2009_v38, %v2008_v54 }
 0x35a   :  { %2022 = vst.msk [vmem:[#allocation3] sm:$0x3] %vm2020_vm2, %v2016_v41 }
 0x35b   :  { %2662 = shalt.err (!%p2659_p4)
}
 0x35c   :  { %s2663_s11 = scalar_lea.hbm %s3734_s7, 32 }
 0x35d   :  { %p2664_p5 = scmp.ne.s32.totalorder %s3734_s7, %s2663_s11  ;;  %p2667_p6 = scmp.lt.u32.totalorder %s2663_s11, %s3734_s7 }
 0x35f   :  { %p2669_p7 = pnand %p2667_p6, %p2664_p5 }
 0x361   :  { %2672 = shalt.err (!%p2669_p7)
}
 0x362   :  { %2032 = dma.vmem_to_hbm [thread:$0]  %s2030_s8, 32, %s3734_s7, [#allocation4]  }
 0x363   :  { %2673 = dma.done.wait [#allocation4], 32  }
 0x364   :  { %2674 = vsyncadd [#allocation4], 4294967264 }
 0x365   :  { %2036 = vsyncpa [#allocation4], 1 }

</bundles_post_ra>
